<compile_context>
chip_gen: v7x
topology: tpu7x:2x2x1
jax: 0.10.0
libtpu: 0.0.40
codegen_flags: <defaults>
</compile_context>

<pallas_src>
import functools

import jax
import jax.numpy as jnp
from jax import lax
from jax.experimental import pallas as pl
from jax.experimental.pallas import tpu as pltpu


def _round_up(n, m):
    return (n + m - 1) // m * m


def _vmem_capacity_bytes():
    try:
        return int(pltpu.get_tpu_info().vmem_capacity_bytes)
    except Exception:  # conservative default (v5e/v6e physical VMEM)
        return 128 * 1024 * 1024


def _ff_kernel(x_ref, w1_ref, b1_ref, w2_ref, b2_ref, gamma_ref, beta_ref,
               o_ref, acc_ref, *, eps, d_model):
    k = pl.program_id(1)

    x = x_ref[...]                                            # (tr, dp), native dtype

    # Initialize the f32 accumulator with the residual + output bias.
    @pl.when(k == 0)
    def _():
        acc_ref[...] = x.astype(jnp.float32) + b2_ref[...].astype(jnp.float32)

    # Linear1 chunk (MXU, f32 accumulation) + bias + ReLU; cast the hidden
    # activation back to the weight dtype immediately (halves the largest live
    # intermediate, bf16 VALU on v6e/v7x).
    h = jnp.dot(x, w1_ref[...], preferred_element_type=jnp.float32)   # (tr, tik)
    h = jnp.maximum(h + b1_ref[...].astype(jnp.float32), 0.0).astype(w2_ref.dtype)

    # Linear2 chunk accumulated in f32.
    acc_ref[...] += jnp.dot(h, w2_ref[...], preferred_element_type=jnp.float32)

    # Fused residual LayerNorm on the last d_inner chunk.
    @pl.when(k == pl.num_programs(1) - 1)
    def _():
        z = acc_ref[...]                                      # (tr, dp) f32
        dp = z.shape[-1]
        inv_d = 1.0 / d_model
        # Padded lanes of x / W2-columns / b2 are zero, so row sums over dp are
        # exact; only the centered term needs explicit masking for the variance.
        mean = jnp.sum(z, axis=-1, keepdims=True) * inv_d
        cent = z - mean
        if dp != d_model:
            lane = lax.broadcasted_iota(jnp.int32, (1, dp), 1)
            cent = jnp.where(lane < d_model, cent, 0.0)
        var = jnp.sum(cent * cent, axis=-1, keepdims=True) * inv_d
        scale = gamma_ref[...].astype(jnp.float32) * lax.rsqrt(var + eps)
        out = cent * scale + beta_ref[...].astype(jnp.float32)
        o_ref[...] = out.astype(o_ref.dtype)


def positionwise_ff(x, w1, b1, w2, b2, gamma, beta, *, eps=1e-5,
                    row_tile=None, inner_tile=None, compute_dtype=None):
    """Post-norm PositionwiseFF.  x: (seq, batch, d_model) -> same shape/dtype.

    w1: (d_model, d_inner), w2: (d_inner, d_model) — PyTorch Linear weights
    pre-transposed to (in, out) so the kernel computes plain x @ W.
    compute_dtype: optionally cast x/W1/W2 (e.g. to bf16) for the matmuls;
    accumulation and LayerNorm stay f32, output keeps x's original dtype.
    """
    seq, bsz, d_model = x.shape
    d_inner = w1.shape[1]
    rows = seq * bsz
    out_dtype = x.dtype

    if compute_dtype is not None:
        x = x.astype(compute_dtype)
        w1 = w1.astype(compute_dtype)
        w2 = w2.astype(compute_dtype)

    x_itemsize = x.dtype.itemsize
    w_itemsize = w1.dtype.itemsize
    cap = _vmem_capacity_bytes()

    # Lane-dense output feature dim (multiple of 128).
    dp = _round_up(d_model, 128)
    dip_full = _round_up(d_inner, 128)

    # ---- d_inner chunking: keep W1/W2 fully VMEM-resident when they fit the
    # budget, otherwise stream chunks along a reduction grid axis. ----
    w_budget = int(cap * 0.45)
    if inner_tile is not None:
        tik = min(_round_up(inner_tile, 128), dip_full)
    elif 2 * dp * dip_full * w_itemsize <= w_budget:
        tik = dip_full
    else:
        tik_max = max(128, (w_budget // (4 * dp * w_itemsize)) // 128 * 128)
        nk_est = pl.cdiv(dip_full, tik_max)
        tik = _round_up(pl.cdiv(dip_full, nk_est), 128)
    dip = _round_up(d_inner, tik)
    nk = dip // tik
    resident = nk == 1

    # ---- Row tile: generation-aware default, >= 2 tiles when rows permit. ----
    sub = 8 if x_itemsize >= 4 else 16
    if row_tile is None:
        row_tile = 512 if cap >= (100 << 20) else 256
    tr = max(sub, min(_round_up(row_tile, sub), _round_up(pl.cdiv(rows, 2), sub)))
    n_row = pl.cdiv(rows, tr)

    # ---- Activations: reshape only; lane-pad only when d_model % 128 != 0. ----
    x2d = x.reshape(rows, d_model)
    if dp != d_model:
        x2d = jnp.pad(x2d, ((0, 0), (0, dp - d_model)))

    # ---- Params: pad only when needed (no-op for 128-multiple models). For
    # repeated forwards, jit the wrapper (or pre-pad) so this happens once. ----
    if (dp, dip) != (d_model, d_inner):
        w1p = jnp.pad(w1, ((0, dp - d_model), (0, dip - d_inner)))
        w2p = jnp.pad(w2, ((0, dip - d_inner), (0, dp - d_model)))
        b1p = jnp.pad(b1, (0, dip - d_inner))
        b2p = jnp.pad(b2, (0, dp - d_model))
        g1 = jnp.pad(gamma, (0, dp - d_model))
        be1 = jnp.pad(beta, (0, dp - d_model))
    else:
        w1p, w2p, b1p, b2p, g1, be1 = w1, w2, b1, b2, gamma, beta
    b1p = b1p.reshape(1, dip)
    b2p = b2p.reshape(1, dp)
    g2d = g1.reshape(1, dp)
    be2d = be1.reshape(1, dp)

    # ---- Generation-aware VMEM limit from the real footprint. ----
    wbufs = 1 if resident else 2
    need = (
        wbufs * 2 * dp * tik * w_itemsize          # W1 + W2 blocks
        + 2 * 2 * tr * dp * x_itemsize             # x & out tiles, double-buffered
        + tr * dp * 4                              # f32 accumulator scratch
        + tr * tik * (4 + w_itemsize)              # hidden intermediates
        + (2 * tik + 6 * dp) * 4 * 8               # bias/gamma/beta vectors (padded)
        + (16 << 20)                               # Mosaic internal scratch headroom
    )
    vmem_limit = int(min(max(need, 32 << 20), cap - (8 << 20)))

    kernel = functools.partial(_ff_kernel, eps=eps, d_model=d_model)

    def _spec(shape, imap, single_buffer):
        if single_buffer:
            return pl.BlockSpec(shape, imap, pipeline_mode=pl.Buffered(1))
        return pl.BlockSpec(shape, imap)

    def _call(use_single_buffer):
        sb_w = resident and use_single_buffer      # weights constant only if nk == 1
        sb_c = use_single_buffer                   # b2/gamma/beta always constant
        grid_spec = pltpu.PrefetchScalarGridSpec(
            num_scalar_prefetch=0,
            grid=(n_row, nk),
            in_specs=[
                pl.BlockSpec((tr, dp), lambda i, k: (i, 0)),      # x tile (pipelined)
                _spec((dp, tik), lambda i, k: (0, k), sb_w),      # W1 chunk
                _spec((1, tik), lambda i, k: (0, k), sb_w),       # b1 chunk
                _spec((tik, dp), lambda i, k: (k, 0), sb_w),      # W2 chunk
                _spec((1, dp), lambda i, k: (0, 0), sb_c),        # b2
                _spec((1, dp), lambda i, k: (0, 0), sb_c),        # gamma
                _spec((1, dp), lambda i, k: (0, 0), sb_c),        # beta
            ],
            out_specs=pl.BlockSpec((tr, dp), lambda i, k: (i, 0)),
            scratch_shapes=[pltpu.VMEM((tr, dp), jnp.float32)],
        )
        return pl.pallas_call(
            kernel,
            out_shape=jax.ShapeDtypeStruct((rows, dp), out_dtype),
            grid_spec=grid_spec,
            compiler_params=pltpu.CompilerParams(
                dimension_semantics=("parallel", "arbitrary"),
                vmem_limit_bytes=vmem_limit),
        )(x2d, w1p, b1p, w2p, b2p, g2d, be2d)

    try:
        out2d = _call(True)
    except Exception:
        # Older jax without BlockSpec(pipeline_mode=...): fall back to default
        # double-buffering (correct, slightly more VMEM).
        out2d = _call(False)

    if dp != d_model:
        out2d = out2d[:, :d_model]
    return out2d.reshape(seq, bsz, d_model)


def _reference(x, w1, b1, w2, b2, gamma, beta, eps=1e-5):
    h = jnp.maximum(x @ w1 + b1, 0.0)
    y = h @ w2 + b2
    z = x + y
    mean = jnp.mean(z, axis=-1, keepdims=True)
    var = jnp.mean((z - mean) ** 2, axis=-1, keepdims=True)
    return (z - mean) / jnp.sqrt(var + eps) * gamma + beta


def _make_params(key, d_model, d_inner, dtype=jnp.float32):
    k_w1, k_b1, k_w2, k_b2 = jax.random.split(key, 4)
    w1 = jax.random.normal(k_w1, (d_model, d_inner), dtype=dtype) * 0.05
    b1 = jax.random.normal(k_b1, (d_inner,), dtype=dtype) * 0.01
    w2 = jax.random.normal(k_w2, (d_inner, d_model), dtype=dtype) * 0.05
    b2 = jax.random.normal(k_b2, (d_model,), dtype=dtype) * 0.01
    gamma = jnp.ones((d_model,), dtype=dtype)
    beta = jnp.zeros((d_model,), dtype=dtype)
    return w1, b1, w2, b2, gamma, beta


# TODO(synk): dropout and the pre_lnorm=True path are intentionally omitted
# (inference-time, post-norm config only).

if __name__ == "__main__":
    key = jax.random.PRNGKey(0)
    k1, k2, k3, k4, k5, k6 = jax.random.split(key, 6)

    # Test 1: small shapes, non-128 d_model (lane-padding path), resident weights.
    seq, bsz, d_model, d_inner = 8, 2, 32, 64
    x = jax.random.normal(k1, (seq, bsz, d_model), dtype=jnp.float32)
    p1 = _make_params(k2, d_model, d_inner)
    out = jax.block_until_ready(positionwise_ff(x, *p1))
    ref = _reference(x, *p1)
    assert out.shape == x.shape and out.dtype == x.dtype
    assert jnp.allclose(out, ref, atol=1e-4, rtol=1e-4), "mismatch vs reference (test 1)"

    # Test 2: ragged rows (boundary-handled last row tile, no row padding),
    # small row tile (multi-step grid), and forced d_inner chunking (nk > 1
    # accumulator path with zero-padded last chunk).
    seq2, bsz2, d_model2, d_inner2 = 13, 3, 48, 192
    x2 = jax.random.normal(k3, (seq2, bsz2, d_model2), dtype=jnp.float32)
    p2 = _make_params(k4, d_model2, d_inner2)
    out2 = jax.block_until_ready(
        positionwise_ff(x2, *p2, row_tile=16, inner_tile=128))
    ref2 = _reference(x2, *p2)
    assert out2.shape == x2.shape
    assert jnp.allclose(out2, ref2, atol=1e-4, rtol=1e-4), "mismatch vs reference (test 2)"

    # Test 3: bf16 model, 128-multiple d_model (no lane pad, no output slice).
    seq3, bsz3, d_model3, d_inner3 = 16, 2, 128, 256
    x3 = jax.random.normal(k5, (seq3, bsz3, d_model3), dtype=jnp.float32).astype(jnp.bfloat16)
    p3 = tuple(a.astype(jnp.bfloat16) for a in _make_params(k6, d_model3, d_inner3))
    out3 = jax.block_until_ready(positionwise_ff(x3, *p3))
    ref3 = _reference(x3.astype(jnp.float32),
                      *(a.astype(jnp.float32) for a in p3))
    assert out3.shape == x3.shape and out3.dtype == jnp.bfloat16
    assert jnp.allclose(out3.astype(jnp.float32), ref3, atol=7e-2, rtol=7e-2), \
        "mismatch vs reference (test 3)"

    print("KERNEL_OK")
</pallas_src>

<mosaic_0001>
module attributes {stable_mosaic.version = 11 : i64} {
  func.func @_ff_kernel(%arg0: i32, %arg1: i32, %arg2: memref<8x128xf32, #tpu.memory_space<vmem>>, %arg3: memref<128x128xf32, #tpu.memory_space<vmem>>, %arg4: memref<1x128xf32, #tpu.memory_space<vmem>>, %arg5: memref<128x128xf32, #tpu.memory_space<vmem>>, %arg6: memref<1x128xf32, #tpu.memory_space<vmem>>, %arg7: memref<1x128xf32, #tpu.memory_space<vmem>>, %arg8: memref<1x128xf32, #tpu.memory_space<vmem>>, %arg9: memref<8x128xf32, #tpu.memory_space<vmem>>, %arg10: memref<8x128xf32, #tpu.memory_space<vmem>>) attributes {dimension_semantics = [#tpu.dimension_semantics<parallel>, #tpu.dimension_semantics<arbitrary>], iteration_bounds = array<i64: 2, 1>, scalar_prefetch = 0 : i64, scratch_operands = 1 : i64, tpu.core_type = #tpu.core_type<tc>, window_params = [{transform_indices = @transform_0, window_bounds = array<i64: 8, 128>}, {pipeline_mode = #tpu.pipeline_mode<synchronous>, transform_indices = @transform_1, window_bounds = array<i64: 128, 128>}, {pipeline_mode = #tpu.pipeline_mode<synchronous>, transform_indices = @transform_2, window_bounds = array<i64: 1, 128>}, {pipeline_mode = #tpu.pipeline_mode<synchronous>, transform_indices = @transform_3, window_bounds = array<i64: 128, 128>}, {pipeline_mode = #tpu.pipeline_mode<synchronous>, transform_indices = @transform_4, window_bounds = array<i64: 1, 128>}, {pipeline_mode = #tpu.pipeline_mode<synchronous>, transform_indices = @transform_5, window_bounds = array<i64: 1, 128>}, {pipeline_mode = #tpu.pipeline_mode<synchronous>, transform_indices = @transform_6, window_bounds = array<i64: 1, 128>}, {transform_indices = @transform_7, window_bounds = array<i64: 8, 128>}]} {
    %c0 = arith.constant 0 : index
    %c0_0 = arith.constant 0 : index
    %0 = vector.load %arg2[%c0, %c0_0] : memref<8x128xf32, #tpu.memory_space<vmem>>, vector<8x128xf32>
    %c0_i32 = arith.constant 0 : i32
    %1 = arith.cmpi eq, %arg1, %c0_i32 : i32
    %2 = arith.extui %1 : i1 to i32
    %c0_i32_1 = arith.constant 0 : i32
    %3 = arith.cmpi ne, %2, %c0_i32_1 : i32
    scf.if %3 {
      %c0_16 = arith.constant 0 : index
      %c0_17 = arith.constant 0 : index
      %19 = vector.load %arg6[%c0_16, %c0_17] : memref<1x128xf32, #tpu.memory_space<vmem>>, vector<1x128xf32>
      %20 = vector.broadcast %19 : vector<1x128xf32> to vector<8x128xf32>
      %21 = arith.addf %0, %20 : vector<8x128xf32>
      %c0_18 = arith.constant 0 : index
      %c0_19 = arith.constant 0 : index
      %22 = vector.load %arg10[%c0_18, %c0_19] : memref<8x128xf32, #tpu.memory_space<vmem>>, vector<8x128xf32>
      tpu.vector_store %arg10[%c0_18, %c0_19], %21 {strides = array<i32>} : memref<8x128xf32, #tpu.memory_space<vmem>>, vector<8x128xf32>,
    } else {
    }
    %c0_2 = arith.constant 0 : index
    %c0_3 = arith.constant 0 : index
    %4 = vector.load %arg3[%c0_2, %c0_3] : memref<128x128xf32, #tpu.memory_space<vmem>>, vector<128x128xf32>
    %cst = arith.constant dense<0.000000e+00> : vector<8x128xf32>
    %5 = tpu.matmul %0, %4, %cst {dimension_numbers = #tpu.dot_dimension_numbers<[1], [0], [0], [1], [0, 0, 1, 1], [], []>} : vector<8x128xf32>, vector<128x128xf32>, vector<8x128xf32> -> vector<8x128xf32>
    %c0_4 = arith.constant 0 : index
    %c0_5 = arith.constant 0 : index
    %6 = vector.load %arg4[%c0_4, %c0_5] : memref<1x128xf32, #tpu.memory_space<vmem>>, vector<1x128xf32>
    %7 = vector.broadcast %6 : vector<1x128xf32> to vector<8x128xf32>
    %8 = arith.addf %5, %7 : vector<8x128xf32>
    %cst_6 = arith.constant 0.000000e+00 : f32
    %9 = vector.broadcast %cst_6 : f32 to vector<8x128xf32>
    %10 = arith.maximumf %8, %9 : vector<8x128xf32>
    %c0_7 = arith.constant 0 : index
    %c0_8 = arith.constant 0 : index
    %11 = vector.load %arg10[%c0_7, %c0_8] : memref<8x128xf32, #tpu.memory_space<vmem>>, vector<8x128xf32>
    %c0_9 = arith.constant 0 : index
    %c0_10 = arith.constant 0 : index
    %12 = vector.load %arg5[%c0_9, %c0_10] : memref<128x128xf32, #tpu.memory_space<vmem>>, vector<128x128xf32>
    %cst_11 = arith.constant dense<0.000000e+00> : vector<8x128xf32>
    %13 = tpu.matmul %10, %12, %cst_11 {dimension_numbers = #tpu.dot_dimension_numbers<[1], [0], [0], [1], [0, 0, 1, 1], [], []>} : vector<8x128xf32>, vector<128x128xf32>, vector<8x128xf32> -> vector<8x128xf32>
    %14 = arith.addf %11, %13 : vector<8x128xf32>
    %c0_12 = arith.constant 0 : index
    %c0_13 = arith.constant 0 : index
    %15 = vector.load %arg10[%c0_12, %c0_13] : memref<8x128xf32, #tpu.memory_space<vmem>>, vector<8x128xf32>
    tpu.vector_store %arg10[%c0_12, %c0_13], %14 {strides = array<i32>} : memref<8x128xf32, #tpu.memory_space<vmem>>, vector<8x128xf32>,
    %c0_i32_14 = arith.constant 0 : i32
    %16 = arith.cmpi eq, %arg1, %c0_i32_14 : i32
    %17 = arith.extui %16 : i1 to i32
    %c0_i32_15 = arith.constant 0 : i32
    %18 = arith.cmpi ne, %17, %c0_i32_15 : i32
    scf.if %18 {
      %c0_16 = arith.constant 0 : index
      %c0_17 = arith.constant 0 : index
      %19 = vector.load %arg10[%c0_16, %c0_17] : memref<8x128xf32, #tpu.memory_space<vmem>>, vector<8x128xf32>
      %cst_18 = arith.constant dense<0.000000e+00> : vector<8xf32>
      %20 = vector.multi_reduction <add>, %19, %cst_18 [1] : vector<8x128xf32> to vector<8xf32>
      %21 = vector.shape_cast %20 : vector<8xf32> to vector<8x1xf32>
      %cst_19 = arith.constant 3.125000e-02 : f32
      %22 = vector.broadcast %cst_19 : f32 to vector<8x1xf32>
      %23 = arith.mulf %21, %22 : vector<8x1xf32>
      %24 = vector.broadcast %23 : vector<8x1xf32> to vector<8x128xf32>
      %25 = arith.subf %19, %24 : vector<8x128xf32>
      %26 = tpu.iota {dimensions = array<i32: 1>} : vector<1x128xi32>
      %c32_i32 = arith.constant 32 : i32
      %27 = vector.broadcast %c32_i32 : i32 to vector<1x128xi32>
      %28 = arith.cmpi slt, %26, %27 : vector<1x128xi32>
      %cst_20 = arith.constant 0.000000e+00 : f32
      %29 = vector.shape_cast %28 : vector<1x128xi1> to vector<1x128xi1>
      %30 = vector.broadcast %29 : vector<1x128xi1> to vector<8x128xi1>
      %31 = vector.broadcast %cst_20 : f32 to vector<8x128xf32>
      %32 = arith.select %30, %25, %31 : vector<8x128xi1>, vector<8x128xf32>
      %33 = arith.mulf %32, %32 : vector<8x128xf32>
      %cst_21 = arith.constant dense<0.000000e+00> : vector<8xf32>
      %34 = vector.multi_reduction <add>, %33, %cst_21 [1] : vector<8x128xf32> to vector<8xf32>
      %35 = vector.shape_cast %34 : vector<8xf32> to vector<8x1xf32>
      %cst_22 = arith.constant 3.125000e-02 : f32
      %36 = vector.broadcast %cst_22 : f32 to vector<8x1xf32>
      %37 = arith.mulf %35, %36 : vector<8x1xf32>
      %c0_23 = arith.constant 0 : index
      %c0_24 = arith.constant 0 : index
      %38 = vector.load %arg7[%c0_23, %c0_24] : memref<1x128xf32, #tpu.memory_space<vmem>>, vector<1x128xf32>
      %cst_25 = arith.constant 9.99999974E-6 : f32
      %39 = vector.broadcast %cst_25 : f32 to vector<8x1xf32>
      %40 = arith.addf %37, %39 : vector<8x1xf32>
      %41 = math.rsqrt %40 : vector<8x1xf32>
      %42 = vector.broadcast %38 : vector<1x128xf32> to vector<8x128xf32>
      %43 = vector.broadcast %41 : vector<8x1xf32> to vector<8x128xf32>
      %44 = arith.mulf %42, %43 : vector<8x128xf32>
      %45 = arith.mulf %32, %44 : vector<8x128xf32>
      %c0_26 = arith.constant 0 : index
      %c0_27 = arith.constant 0 : index
      %46 = vector.load %arg8[%c0_26, %c0_27] : memref<1x128xf32, #tpu.memory_space<vmem>>, vector<1x128xf32>
      %47 = vector.broadcast %46 : vector<1x128xf32> to vector<8x128xf32>
      %48 = arith.addf %45, %47 : vector<8x128xf32>
      %c0_28 = arith.constant 0 : index
      %c0_29 = arith.constant 0 : index
      %49 = vector.load %arg9[%c0_28, %c0_29] : memref<8x128xf32, #tpu.memory_space<vmem>>, vector<8x128xf32>
      tpu.vector_store %arg9[%c0_28, %c0_29], %48 {strides = array<i32>} : memref<8x128xf32, #tpu.memory_space<vmem>>, vector<8x128xf32>,
    } else {
    }
    return
  }
  func.func @transform_0(%arg0: i32, %arg1: i32) -> (i32, i32) {
    %c0_i32 = arith.constant 0 : i32
    %c0_i32_0 = arith.constant 0 : i32
    return %arg0, %c0_i32 : i32, i32
  }
  func.func @transform_1(%arg0: i32, %arg1: i32) -> (i32, i32) {
    %c0_i32 = arith.constant 0 : i32
    %c0_i32_0 = arith.constant 0 : i32
    return %c0_i32, %arg1 : i32, i32
  }
  func.func @transform_2(%arg0: i32, %arg1: i32) -> (i32, i32) {
    %c0_i32 = arith.constant 0 : i32
    %c0_i32_0 = arith.constant 0 : i32
    return %c0_i32, %arg1 : i32, i32
  }
  func.func @transform_3(%arg0: i32, %arg1: i32) -> (i32, i32) {
    %c0_i32 = arith.constant 0 : i32
    %c0_i32_0 = arith.constant 0 : i32
    return %arg1, %c0_i32 : i32, i32
  }
  func.func @transform_4(%arg0: i32, %arg1: i32) -> (i32, i32) {
    %c0_i32 = arith.constant 0 : i32
    %c0_i32_0 = arith.constant 0 : i32
    %c0_i32_1 = arith.constant 0 : i32
    return %c0_i32, %c0_i32_0 : i32, i32
  }
  func.func @transform_5(%arg0: i32, %arg1: i32) -> (i32, i32) {
    %c0_i32 = arith.constant 0 : i32
    %c0_i32_0 = arith.constant 0 : i32
    %c0_i32_1 = arith.constant 0 : i32
    return %c0_i32, %c0_i32_0 : i32, i32
  }
  func.func @transform_6(%arg0: i32, %arg1: i32) -> (i32, i32) {
    %c0_i32 = arith.constant 0 : i32
    %c0_i32_0 = arith.constant 0 : i32
    %c0_i32_1 = arith.constant 0 : i32
    return %c0_i32, %c0_i32_0 : i32, i32
  }
  func.func @transform_7(%arg0: i32, %arg1: i32) -> (i32, i32) {
    %c0_i32 = arith.constant 0 : i32
    %c0_i32_0 = arith.constant 0 : i32
    return %arg0, %c0_i32 : i32, i32
  }
}

module attributes {stable_mosaic.version = 11 : i64} {
  func.func @_ff_kernel(%arg0: i32, %arg1: i32, %arg2: memref<8x128xf32, #tpu.memory_space<vmem>>, %arg3: memref<128x128xf32, #tpu.memory_space<vmem>>, %arg4: memref<1x128xf32, #tpu.memory_space<vmem>>, %arg5: memref<128x128xf32, #tpu.memory_space<vmem>>, %arg6: memref<1x128xf32, #tpu.memory_space<vmem>>, %arg7: memref<1x128xf32, #tpu.memory_space<vmem>>, %arg8: memref<1x128xf32, #tpu.memory_space<vmem>>, %arg9: memref<8x128xf32, #tpu.memory_space<vmem>>, %arg10: memref<8x128xf32, #tpu.memory_space<vmem>>) attributes {dimension_semantics = [#tpu.dimension_semantics<parallel>, #tpu.dimension_semantics<arbitrary>], iteration_bounds = array<i64: 2, 1>, scalar_prefetch = 0 : i64, scratch_operands = 1 : i64, tpu.core_type = #tpu.core_type<tc>, window_params = [{transform_indices = @transform_0, window_bounds = array<i64: 8, 128>}, {transform_indices = @transform_1, window_bounds = array<i64: 128, 128>}, {transform_indices = @transform_2, window_bounds = array<i64: 1, 128>}, {transform_indices = @transform_3, window_bounds = array<i64: 128, 128>}, {pipeline_mode = #tpu.pipeline_mode<synchronous>, transform_indices = @transform_4, window_bounds = array<i64: 1, 128>}, {pipeline_mode = #tpu.pipeline_mode<synchronous>, transform_indices = @transform_5, window_bounds = array<i64: 1, 128>}, {pipeline_mode = #tpu.pipeline_mode<synchronous>, transform_indices = @transform_6, window_bounds = array<i64: 1, 128>}, {transform_indices = @transform_7, window_bounds = array<i64: 8, 128>}]} {
    %c0 = arith.constant 0 : index
    %c0_0 = arith.constant 0 : index
    %0 = vector.load %arg2[%c0, %c0_0] : memref<8x128xf32, #tpu.memory_space<vmem>>, vector<8x128xf32>
    %c0_i32 = arith.constant 0 : i32
    %1 = arith.cmpi eq, %arg1, %c0_i32 : i32
    %2 = arith.extui %1 : i1 to i32
    %c0_i32_1 = arith.constant 0 : i32
    %3 = arith.cmpi ne, %2, %c0_i32_1 : i32
    scf.if %3 {
      %c0_16 = arith.constant 0 : index
      %c0_17 = arith.constant 0 : index
      %19 = vector.load %arg6[%c0_16, %c0_17] : memref<1x128xf32, #tpu.memory_space<vmem>>, vector<1x128xf32>
      %20 = vector.broadcast %19 : vector<1x128xf32> to vector<8x128xf32>
      %21 = arith.addf %0, %20 : vector<8x128xf32>
      %c0_18 = arith.constant 0 : index
      %c0_19 = arith.constant 0 : index
      %22 = vector.load %arg10[%c0_18, %c0_19] : memref<8x128xf32, #tpu.memory_space<vmem>>, vector<8x128xf32>
      tpu.vector_store %arg10[%c0_18, %c0_19], %21 {strides = array<i32>} : memref<8x128xf32, #tpu.memory_space<vmem>>, vector<8x128xf32>,
    } else {
    }
    %c0_2 = arith.constant 0 : index
    %c0_3 = arith.constant 0 : index
    %4 = vector.load %arg3[%c0_2, %c0_3] : memref<128x128xf32, #tpu.memory_space<vmem>>, vector<128x128xf32>
    %cst = arith.constant dense<0.000000e+00> : vector<8x128xf32>
    %5 = tpu.matmul %0, %4, %cst {dimension_numbers = #tpu.dot_dimension_numbers<[1], [0], [0], [1], [0, 0, 1, 1], [], []>} : vector<8x128xf32>, vector<128x128xf32>, vector<8x128xf32> -> vector<8x128xf32>
    %c0_4 = arith.constant 0 : index
    %c0_5 = arith.constant 0 : index
    %6 = vector.load %arg4[%c0_4, %c0_5] : memref<1x128xf32, #tpu.memory_space<vmem>>, vector<1x128xf32>
    %7 = vector.broadcast %6 : vector<1x128xf32> to vector<8x128xf32>
    %8 = arith.addf %5, %7 : vector<8x128xf32>
    %cst_6 = arith.constant 0.000000e+00 : f32
    %9 = vector.broadcast %cst_6 : f32 to vector<8x128xf32>
    %10 = arith.maximumf %8, %9 : vector<8x128xf32>
    %c0_7 = arith.constant 0 : index
    %c0_8 = arith.constant 0 : index
    %11 = vector.load %arg10[%c0_7, %c0_8] : memref<8x128xf32, #tpu.memory_space<vmem>>, vector<8x128xf32>
    %c0_9 = arith.constant 0 : index
    %c0_10 = arith.constant 0 : index
    %12 = vector.load %arg5[%c0_9, %c0_10] : memref<128x128xf32, #tpu.memory_space<vmem>>, vector<128x128xf32>
    %cst_11 = arith.constant dense<0.000000e+00> : vector<8x128xf32>
    %13 = tpu.matmul %10, %12, %cst_11 {dimension_numbers = #tpu.dot_dimension_numbers<[1], [0], [0], [1], [0, 0, 1, 1], [], []>} : vector<8x128xf32>, vector<128x128xf32>, vector<8x128xf32> -> vector<8x128xf32>
    %14 = arith.addf %11, %13 : vector<8x128xf32>
    %c0_12 = arith.constant 0 : index
    %c0_13 = arith.constant 0 : index
    %15 = vector.load %arg10[%c0_12, %c0_13] : memref<8x128xf32, #tpu.memory_space<vmem>>, vector<8x128xf32>
    tpu.vector_store %arg10[%c0_12, %c0_13], %14 {strides = array<i32>} : memref<8x128xf32, #tpu.memory_space<vmem>>, vector<8x128xf32>,
    %c0_i32_14 = arith.constant 0 : i32
    %16 = arith.cmpi eq, %arg1, %c0_i32_14 : i32
    %17 = arith.extui %16 : i1 to i32
    %c0_i32_15 = arith.constant 0 : i32
    %18 = arith.cmpi ne, %17, %c0_i32_15 : i32
    scf.if %18 {
      %c0_16 = arith.constant 0 : index
      %c0_17 = arith.constant 0 : index
      %19 = vector.load %arg10[%c0_16, %c0_17] : memref<8x128xf32, #tpu.memory_space<vmem>>, vector<8x128xf32>
      %cst_18 = arith.constant dense<0.000000e+00> : vector<8xf32>
      %20 = vector.multi_reduction <add>, %19, %cst_18 [1] : vector<8x128xf32> to vector<8xf32>
      %21 = vector.shape_cast %20 : vector<8xf32> to vector<8x1xf32>
      %cst_19 = arith.constant 3.125000e-02 : f32
      %22 = vector.broadcast %cst_19 : f32 to vector<8x1xf32>
      %23 = arith.mulf %21, %22 : vector<8x1xf32>
      %24 = vector.broadcast %23 : vector<8x1xf32> to vector<8x128xf32>
      %25 = arith.subf %19, %24 : vector<8x128xf32>
      %26 = tpu.iota {dimensions = array<i32: 1>} : vector<1x128xi32>
      %c32_i32 = arith.constant 32 : i32
      %27 = vector.broadcast %c32_i32 : i32 to vector<1x128xi32>
      %28 = arith.cmpi slt, %26, %27 : vector<1x128xi32>
      %cst_20 = arith.constant 0.000000e+00 : f32
      %29 = vector.shape_cast %28 : vector<1x128xi1> to vector<1x128xi1>
      %30 = vector.broadcast %29 : vector<1x128xi1> to vector<8x128xi1>
      %31 = vector.broadcast %cst_20 : f32 to vector<8x128xf32>
      %32 = arith.select %30, %25, %31 : vector<8x128xi1>, vector<8x128xf32>
      %33 = arith.mulf %32, %32 : vector<8x128xf32>
      %cst_21 = arith.constant dense<0.000000e+00> : vector<8xf32>
      %34 = vector.multi_reduction <add>, %33, %cst_21 [1] : vector<8x128xf32> to vector<8xf32>
      %35 = vector.shape_cast %34 : vector<8xf32> to vector<8x1xf32>
      %cst_22 = arith.constant 3.125000e-02 : f32
      %36 = vector.broadcast %cst_22 : f32 to vector<8x1xf32>
      %37 = arith.mulf %35, %36 : vector<8x1xf32>
      %c0_23 = arith.constant 0 : index
      %c0_24 = arith.constant 0 : index
      %38 = vector.load %arg7[%c0_23, %c0_24] : memref<1x128xf32, #tpu.memory_space<vmem>>, vector<1x128xf32>
      %cst_25 = arith.constant 9.99999974E-6 : f32
      %39 = vector.broadcast %cst_25 : f32 to vector<8x1xf32>
      %40 = arith.addf %37, %39 : vector<8x1xf32>
      %41 = math.rsqrt %40 : vector<8x1xf32>
      %42 = vector.broadcast %38 : vector<1x128xf32> to vector<8x128xf32>
      %43 = vector.broadcast %41 : vector<8x1xf32> to vector<8x128xf32>
      %44 = arith.mulf %42, %43 : vector<8x128xf32>
      %45 = arith.mulf %32, %44 : vector<8x128xf32>
      %c0_26 = arith.constant 0 : index
      %c0_27 = arith.constant 0 : index
      %46 = vector.load %arg8[%c0_26, %c0_27] : memref<1x128xf32, #tpu.memory_space<vmem>>, vector<1x128xf32>
      %47 = vector.broadcast %46 : vector<1x128xf32> to vector<8x128xf32>
      %48 = arith.addf %45, %47 : vector<8x128xf32>
      %c0_28 = arith.constant 0 : index
      %c0_29 = arith.constant 0 : index
      %49 = vector.load %arg9[%c0_28, %c0_29] : memref<8x128xf32, #tpu.memory_space<vmem>>, vector<8x128xf32>
      tpu.vector_store %arg9[%c0_28, %c0_29], %48 {strides = array<i32>} : memref<8x128xf32, #tpu.memory_space<vmem>>, vector<8x128xf32>,
    } else {
    }
    return
  }
  func.func @transform_0(%arg0: i32, %arg1: i32) -> (i32, i32) {
    %c0_i32 = arith.constant 0 : i32
    %c0_i32_0 = arith.constant 0 : i32
    return %arg0, %c0_i32 : i32, i32
  }
  func.func @transform_1(%arg0: i32, %arg1: i32) -> (i32, i32) {
    %c0_i32 = arith.constant 0 : i32
    %c0_i32_0 = arith.constant 0 : i32
    return %c0_i32, %arg1 : i32, i32
  }
  func.func @transform_2(%arg0: i32, %arg1: i32) -> (i32, i32) {
    %c0_i32 = arith.constant 0 : i32
    %c0_i32_0 = arith.constant 0 : i32
    return %c0_i32, %arg1 : i32, i32
  }
  func.func @transform_3(%arg0: i32, %arg1: i32) -> (i32, i32) {
    %c0_i32 = arith.constant 0 : i32
    %c0_i32_0 = arith.constant 0 : i32
    return %arg1, %c0_i32 : i32, i32
  }
  func.func @transform_4(%arg0: i32, %arg1: i32) -> (i32, i32) {
    %c0_i32 = arith.constant 0 : i32
    %c0_i32_0 = arith.constant 0 : i32
    %c0_i32_1 = arith.constant 0 : i32
    return %c0_i32, %c0_i32_0 : i32, i32
  }
  func.func @transform_5(%arg0: i32, %arg1: i32) -> (i32, i32) {
    %c0_i32 = arith.constant 0 : i32
    %c0_i32_0 = arith.constant 0 : i32
    %c0_i32_1 = arith.constant 0 : i32
    return %c0_i32, %c0_i32_0 : i32, i32
  }
  func.func @transform_6(%arg0: i32, %arg1: i32) -> (i32, i32) {
    %c0_i32 = arith.constant 0 : i32
    %c0_i32_0 = arith.constant 0 : i32
    %c0_i32_1 = arith.constant 0 : i32
    return %c0_i32, %c0_i32_0 : i32, i32
  }
  func.func @transform_7(%arg0: i32, %arg1: i32) -> (i32, i32) {
    %c0_i32 = arith.constant 0 : i32
    %c0_i32_0 = arith.constant 0 : i32
    return %arg0, %c0_i32 : i32, i32
  }
}

</mosaic_0001>

<bundles_post_ra>
// kernel: tpu_custom_call.1
= control target key start
LH: loop header
LB: loop body
LE: loop exit
PB: predicated region body
PF: predicated region fallthrough
CT: control target
= control target key end

     0   :  { %12 = vsyncpa [#allocation4], 0  ;;  %s1499_s0 = inlined_call_operand.hbm [shape: f32[16,128], index: 0, kind: input, shape index: {}]   ;;  %s1500_s1 = inlined_call_operand.hbm [shape: f32[128,128], index: 1, kind: input, shape index: {}]   ;;  %s1501_s2 = inlined_call_operand.vmem [shape: f32[1,128], index: 2, kind: input, shape index: {}]   ;;  %s1502_s3 = inlined_call_operand.hbm [shape: f32[128,128], index: 3, kind: input, shape index: {}]   ;;  %s1503_s4 = inlined_call_operand.vmem [shape: f32[1,128], index: 4, kind: input, shape index: {}]   ;;  %s1504_s5 = inlined_call_operand.vmem [shape: f32[1,128], index: 5, kind: input, shape index: {}]   ;;  %s1505_s6 = inlined_call_operand.vmem [shape: f32[1,128], index: 6, kind: input, shape index: {}]   ;;  %s1506_s7 = inlined_call_operand.hbm [shape: f32[16,128], index: 7, kind: output, shape index: {}]  }
   0x1   :  { %14 = vsyncpa [#allocation4 + $0x1], 0 }
   0x2   :  { %15 = vsyncpa [#allocation7], 0 }
   0x3   :  { %16 = vsyncpa [#allocation5], 0 }
   0x4   :  { %18 = vsyncpa [#allocation5 + $0x1], 0  ;;  %s1214_s24 = smov 0   ;;  %s1216_s25 = smov 0  }
   0x5   :  { %s1218_s26 = smov 0   ;;  %s1220_s27 = smov 0  }
   0x6   :  { %s1222_s28 = smov 0   ;;  %s1224_s29 = smov 0  }
   0x7 LB: > { %1513 = sst [smem:[#allocation13_spill]] %s1143_s24  ;;  %s727_s30 = sadd.s32 4294967295, %s1163_s29   ;;  %s1163_s29 = sphi %s1224_s29, %s24_s29   ;;  %s1159_s28 = sphi %s1222_s28, %s1534_s28   ;;  %s1155_s27 = sphi %s1220_s27, %s1533_s27   ;;  %s1151_s26 = sphi %s1218_s26, %s1532_s26   ;;  %s1147_s25 = sphi %s1216_s25, %s1531_s25   ;;  %s1143_s24 = sphi %s1214_s24, %s1530_s24  }
   0x8   : > { %s728_s8 = sadd.s32 4294967294, %s1163_s29   ;;  %p56_p0 = scmp.ne.s32.totalorder %s1147_s25, %s1143_s24 }
   0x9   : > { %p1248_p1 = scmp.eq.s32.totalorder %s727_s30, 0  ;;  %p1252_p2 = scmp.eq.s32.totalorder %s727_s30, 1 }
   0xa   : > { %p227_p3 = scmp.eq.s32.totalorder %s728_s8, 1  ;;  %p729_p5 = scmp.ge.s32.totalorder %s1163_s29, 1 }
   0xb   : > { %s1514_s9 = scalar_select %p1248_p1, 1, 0 }
   0xc   : > { %p1258_p4 = por %p1248_p1, %p56_p0  ;;  %p1263_p6 = por %p227_p3, %p56_p0 }
   0xd   : > { %p234_p7 = scmp.lt.s32.totalorder %s1163_s29, 3  ;;  %s1165_s14 = smov [#allocation6]  }
   0xe   : > { %s1516_s11 = scalar_select %p1258_p4, 1, 0 }
   0xf   : > { %s1517_s12 = scalar_select %p1263_p6, 1, 0 }
  0x10   : > { %p1268_p8 = pnand %p729_p5, %p234_p7  ;;  %s248_s15 = sshll.u32 %s1165_s14, 4  ;;  %s1272_s15 = int_to_ptr.vmem [resolvable:$true] %s248_s15 }
  0x11   : > { %1518 = sst [smem:[#allocation14_spill]] %s1517_s12  ;;  %s1166_s17 = smov [#allocation8]  }
  0x12   : > { %p913_p9 = pneg %p1268_p8  ;;  %s270_s18 = sshll.u32 %s1166_s17, 4  ;;  %s1283_s18 = int_to_ptr.vmem [resolvable:$true] %s270_s18 }
  0x13   : > { %s991_s21 = scalar_lea.hbm %s1500_s1, 2048 }
  0x14   : > { %p1279_p11 = pnand %p913_p9, %p1248_p1  ;;  %p992_p12 = scmp.ne.s32.totalorder %s1500_s1, %s991_s21 }
  0x15   : > { %p998_p5 = scmp.lt.u32.totalorder %s991_s21, %s1500_s1 }
  0x16   : > { %p993_p13 = pneg %p1279_p11 }
  0x18   : > { %p994_p0 = pnand %p993_p13, %p992_p12 }
  0x1a   : > { %p995_p3 = pneg %p994_p0 }
  0x1c   : > { %p1000_p7 = pnand %p998_p5, %p995_p3 }
  0x1e   : > { %1003 = shalt.err (!%p1000_p7)
}
  0x1f   : > { %s1004_s14 = scalar_lea.vmem %s1272_s15, 2048  ;;  %p1012_p1 = scmp.lt.s32.totalorder %s1272_s15, %s1272_s15 }
  0x20   : > { %p1005_p9 = scmp.ne.s32.totalorder %s1272_s15, %s1004_s14  ;;  %p1013_p12 = scmp.lt.s32.totalorder %s1004_s14, %s1004_s14 }
  0x22   : > { %p1007_p10 = pnand %p1005_p9, %p993_p13  ;;  %p1014_p0 = por %p1013_p12, %p1012_p1 }
  0x24   : > { %p1008_p6 = pneg %p1007_p10 }
  0x26   : > { %p1015_p4 = pnand %p1014_p0, %p1008_p6 }
  0x28   : > { %1018 = shalt.err (!%p1015_p4)
}
  0x29   : > { %s1167_s17 = smov 128   ;;  %s1168_s19 = smov 8  }
  0x2a   : > { %916 = dma.hbm_to_vmem [thread:$0]  (!%p1279_p11), %s1500_s1, 2048, %s1272_s15, [#allocation7], %s1167_s17, %s1167_s17, %s1168_s19  }
  0x2b   : > { %s1019_s30 = scalar_lea.hbm %s1502_s3, 2048 }
  0x2c   : > { %p1020_p1 = scmp.ne.s32.totalorder %s1502_s3, %s1019_s30  ;;  %p1026_p10 = scmp.lt.u32.totalorder %s1019_s30, %s1502_s3 }
  0x2e   : > { %p1022_p4 = pnand %p1020_p1, %p993_p13 }
  0x30   : > { %p1023_p6 = pneg %p1022_p4 }
  0x32   : > { %p1028_p3 = pnand %p1026_p10, %p1023_p6 }
  0x34   : > { %1031 = shalt.err (!%p1028_p3)
}
  0x35   : > { %s1032_s15 = scalar_lea.vmem %s1283_s18, 2048  ;;  %p1040_p12 = scmp.lt.s32.totalorder %s1283_s18, %s1283_s18 }
  0x36   : > { %p1033_p5 = scmp.ne.s32.totalorder %s1283_s18, %s1032_s15  ;;  %p1041_p0 = scmp.lt.s32.totalorder %s1032_s15, %s1032_s15 }
  0x38   : > { %p1035_p7 = pnand %p1033_p5, %p993_p13  ;;  %p1042_p1 = por %p1041_p0, %p1040_p12 }
  0x3a   : > { %p1036_p9 = pneg %p1035_p7 }
  0x3c   : > { %p1043_p4 = pnand %p1042_p1, %p1036_p9 }
  0x3e   : > { %1046 = shalt.err (!%p1043_p4)
}
  0x3f   : > { %919 = dma.hbm_to_vmem [thread:$0]  (!%p1279_p11), %s1502_s3, 2048, %s1283_s18, [#allocation7], %s1167_s17, %s1167_s17, %s1168_s19  }
  0x40   : > { %s36_s20 = sadd.s32 1, %s1159_s28  ;;  %s43_s21 = sadd.s32 1, %s1151_s26 }
  0x41   : > { %p38_p13 = scmp.ge.s32.totalorder %s36_s20, 2  ;;  %p50_p6 = scmp.ne.s32.totalorder %s1151_s26, %s1147_s25 }
  0x42   : > { %p51_p10 = scmp.eq.s32.totalorder %s1163_s29, 0  ;;  %p930_p3 = scmp.lt.s32.totalorder %s1163_s29, 2 }
  0x43   : > { %s1536_s20 = smov (%p38_p13, %s36_s20), 0  ;;  %p1347_p7 = por %p1252_p2, %p50_p6 }
  0x44   : > { %p52_p5 = por %p51_p10, %p50_p6  ;;  %s40_s22 = ssub.s32 %s1159_s28, %s1536_s20 }
  0x45   : > { %s1521_s16 = scalar_select %p1347_p7, 1, 0 }
  0x46   : > { %s293_s23 = sand.u32 1, %s1151_s26   ;;  %p41_p9 = scmp.eq.s32.totalorder %s40_s22, 0 }
  0x47   : > { %s734_s18 = sshll.u32 %s293_s23, 3  ;;  %s735_s17 = sshll.u32 %s1159_s28, 7 }
  0x48   : > { %s1356_s19 = scalar_select %p41_p9, %s1151_s26, %s43_s21  }
  0x49   : > { %s1361_s14 = scalar_lea.hbm %s1499_s0, %s735_s17  ;;  %s297_s10 = scalar_lea.vmem [#allocation3], %s734_s18 }
  0x4a   : > { %s304_s15 = sshll.u32 %s297_s10, 4  ;;  %p1365_p2 = pnand %p930_p3, %p52_p5  ;;  %s1369_s15 = int_to_ptr.vmem [resolvable:$true] %s304_s15 }
  0x4b   : > { %s294_s12 = scalar_lea.sflag [#allocation4], %s293_s23  ;;  %s1047_s21 = scalar_lea.hbm %s1361_s14, 128 }
  0x4c   : > { %p1048_p11 = scmp.ne.s32.totalorder %s1361_s14, %s1047_s21  ;;  %p1049_p12 = pneg %p1365_p2 }
  0x4d   : > { %s1052_s17 = scalar_lea.hbm %s1499_s0, 256  ;;  %p1053_p4 = scmp.lt.u32.totalorder %s1361_s14, %s1499_s0 }
  0x4e   : > { %p1050_p0 = pnand %p1049_p12, %p1048_p11  ;;  %p1054_p13 = scmp.lt.u32.totalorder %s1052_s17, %s1047_s21 }
  0x4f   : > { %p1056_p10 = scmp.lt.u32.totalorder %s1047_s21, %s1361_s14 }
  0x50   : > { %p1051_p1 = pneg %p1050_p0  ;;  %p1055_p6 = por %p1054_p13, %p1053_p4 }
  0x52   : > { %p1057_p3 = por %p1056_p10, %p1055_p6 }
  0x54   : > { %p1058_p5 = pnand %p1057_p3, %p1051_p1 }
  0x56   : > { %1061 = shalt.err (!%p1058_p5)
}
  0x57   : > { %s1062_s23 = scalar_lea.vmem %s1369_s15, 128  ;;  %s1169_s10 = smov [#allocation3]  }
  0x58   : > { %p1063_p9 = scmp.ne.s32.totalorder %s1369_s15, %s1062_s23  ;;  %s1067_s22 = sshll.u32 %s1169_s10, 4  ;;  %s1068_s22 = int_to_ptr.vmem [resolvable:$false] %s1067_s22 }
  0x59   : > { %s1069_s18 = scalar_lea.vmem %s1068_s22, 256  ;;  %p1070_p7 = scmp.lt.s32.totalorder %s1369_s15, %s1068_s22 }
  0x5a   : > { %p1065_p11 = pnand %p1063_p9, %p1049_p12  ;;  %p1071_p4 = scmp.lt.s32.totalorder %s1069_s18, %s1062_s23 }
  0x5c   : > { %p1066_p0 = pneg %p1065_p11  ;;  %p1072_p13 = por %p1071_p4, %p1070_p7 }
  0x5e   : > { %p1073_p6 = pnand %p1072_p13, %p1066_p0 }
  0x60   : > { %1076 = shalt.err (!%p1073_p6)
}
  0x61   : > { %923 = dma.hbm_to_vmem [thread:$0]  (!%p1365_p2), %s1361_s14, 128, %s1369_s15, %s294_s12  }
  0x62   : > { %313 = sbr.rel (%p1268_p8) target bundleno = 900 (0x384), region = 48  ;;  %s1399_s21 = sand.u32 (!%p1268_p8), 1, %s1147_s25  }
  0x63   : > { %s737_s17 = sshll.u32 (!%p1268_p8), %s1399_s21, 3  ;;  %s316_s30 = scalar_lea.sflag (!%p1268_p8), [#allocation4], %s1399_s21 }
  0x64   : > { %s1405_s8 = scalar_lea.vmem (!%p1268_p8), [#allocation3], %s737_s17  ;;  %p1523_p7 = scmp.ne.s32.totalorder (!%p1268_p8), %s1516_s11, 0 }
  0x69   : > { %1130 = dma.done.wait (%p1523_p7), %s316_s30, 128  }
  0x6a   : > { %1132 = vsyncadd (%p1523_p7), %s316_s30, 4294967168  ;;  %p1524_p2 = scmp.ne.s32.totalorder %s1514_s9, 0 }
  0x6c   : > { %1134 = dma.done.wait (%p1524_p2), [#allocation7], 4096  }
  0x6d   : > { %1136 = vsyncadd (%p1524_p2), [#allocation7], 4294963200  ;;  %v1170_v0 = vmov 0.0|0.0   ;;  %vm1171_vm0 = vmmov 0   ;;  %v1172_v1 = vmov 0.0   ;;  %v379_v2 = vld [vmem:[#allocation6] sm:$0xff]  ;;  %v570_v61 = vlaneseq }
  0x6e   : > { %853 = vmatprep.subr.bf16.mxu0 %v1170_v0  ;;  %815 = vmatprep.mubr.msk.f32.mxu0 %vm1171_vm0, %v1172_v1  ;;  %v380_v3 = vld [vmem:[#allocation6 + $0x8] sm:$0xff]  ;;  %v381_v4 = vld [vmem:[#allocation6 + $0x10] sm:$0xff]  ;;  %v382_v6 = vld [vmem:[#allocation6 + $0x18] sm:$0xff]  ;;  %s746_s10 = sshll.u32 %s1155_s27, 7  ;;  %s360_s22 = scalar_lea.vmem [#allocation9], %s737_s17 }
  0x6f   : > { %877 = vmatprep.subr.bf16.mxu1 %v1170_v0  ;;  %850 = vmatprep.mubr.msk.f32.mxu1 %vm1171_vm0, %v1172_v1  ;;  %v854_v5 = vpack.c.bf16 %v380_v3, %v379_v2  ;;  %v857_v7 = vpack.c.bf16 %v382_v6, %v381_v4  ;;  %v383_v8 = vld [vmem:[#allocation6 + $0x20] sm:$0xff]  ;;  %v384_v9 = vld [vmem:[#allocation6 + $0x28] sm:$0xff]  ;;  %v476_v12 = vld [vmem:[#allocation8 + $0x10] sm:$0xff]  ;;  %v571_v62 = vand.u32 127, %v570_v61  ;;  %s614_s18 = sshll.u32 %s360_s22, 4  ;;  %s1450_s9 = scalar_lea.hbm %s1506_s7, %s746_s10  ;;  %s1452_s18 = int_to_ptr.vmem [resolvable:$true] %s614_s18 }
  0x70   : > { %v474_v10 = vld [vmem:[#allocation8] sm:$0xff]  ;;  %v475_v11 = vld [vmem:[#allocation8 + $0x8] sm:$0xff]  ;;  %v477_v13 = vld [vmem:[#allocation8 + $0x18] sm:$0xff]  ;;  %v860_v14 = vpack.c.bf16 %v384_v9, %v383_v8  ;;  %s601_s11 = scalar_lea.sflag [#allocation5], %s1399_s21  ;;  %s1077_s13 = scalar_lea.vmem %s1452_s18, 128 }
  0x71   : > { %855 = vmatpush3.bf16.msra.mxu0 %v854_v5  ;;  %v878_v15 = vpack.c.bf16 %v475_v11, %v474_v10  ;;  %v385_v16 = vld [vmem:[#allocation6 + $0x30] sm:$0xff]  ;;  %v386_v17 = vld [vmem:[#allocation6 + $0x38] sm:$0xff]  ;;  %v881_v18 = vpack.c.bf16 %v477_v13, %v476_v12  ;;  %v478_v19 = vld [vmem:[#allocation8 + $0x20] sm:$0xff]  ;;  %vm572_vm1 = vcmp.lt.s32.totalorder %v571_v62, 32  ;;  %p1078_p8 = scmp.ne.s32.totalorder %s1452_s18, %s1077_s13  ;;  %p1525_p12 = scmp.ne.s32.totalorder %s1521_s16, 0 }
  0x72   : > { %856 = vmatprep.subr.bf16.mxu0 %v1170_v0  ;;  %v479_v20 = vld [vmem:[#allocation8 + $0x28] sm:$0xff]  ;;  %v863_v21 = vpack.c.bf16 %v386_v17, %v385_v16  ;;  %v387_v22 = vld [vmem:[#allocation6 + $0x40] sm:$0xff]  ;;  %v480_v25 = vld [vmem:[#allocation8 + $0x30] sm:$0xff]  ;;  %s1173_s27 = smov [#allocation9]  }
  0x73   : > { %879 = vmatpush3.bf16.msra.mxu1 %v878_v15  ;;  %v388_v23 = vld [vmem:[#allocation6 + $0x48] sm:$0xff]  ;;  %v884_v24 = vpack.c.bf16 %v479_v20, %v478_v19  ;;  %v481_v26 = vld [vmem:[#allocation8 + $0x38] sm:$0xff]  ;;  %v389_v28 = vld [vmem:[#allocation6 + $0x50] sm:$0xff]  ;;  %p1079_p1 = pnand %p1078_p8, %p1525_p12  ;;  %s1081_s17 = sshll.u32 %s1173_s27, 4  ;;  %s1082_s17 = int_to_ptr.vmem [resolvable:$false] %s1081_s17 }
  0x74   : > { %880 = vmatprep.subr.bf16.mxu1 %v1170_v0  ;;  %v866_v27 = vpack.c.bf16 %v388_v23, %v387_v22  ;;  %v390_v29 = vld [vmem:[#allocation6 + $0x58] sm:$0xff]  ;;  %v887_v30 = vpack.c.bf16 %v481_v26, %v480_v25  ;;  %v482_v31 = vld [vmem:[#allocation8 + $0x40] sm:$0xff]  ;;  %v483_v32 = vld [vmem:[#allocation8 + $0x48] sm:$0xff]  ;;  %s1083_s14 = scalar_lea.vmem %s1082_s17, 256  ;;  %p1084_p3 = scmp.lt.s32.totalorder %s1452_s18, %s1082_s17 }
  0x75   : > { %858 = vmatpush3.bf16.msra.mxu0 %v857_v7  ;;  %v869_v33 = vpack.c.bf16 %v390_v29, %v389_v28  ;;  %v391_v34 = vld [vmem:[#allocation6 + $0x60] sm:$0xff]  ;;  %v392_v35 = vld [vmem:[#allocation6 + $0x68] sm:$0xff]  ;;  %v890_v36 = vpack.c.bf16 %v483_v32, %v482_v31  ;;  %v484_v37 = vld [vmem:[#allocation8 + $0x50] sm:$0xff]  ;;  %p1080_p10 = pneg %p1079_p1  ;;  %p1085_p5 = scmp.lt.s32.totalorder %s1083_s14, %s1077_s13 }
  0x76   : > { %859 = vmatprep.subr.bf16.mxu0 %v1170_v0  ;;  %v485_v38 = vld [vmem:[#allocation8 + $0x58] sm:$0xff]  ;;  %v872_v39 = vpack.c.bf16 %v392_v35, %v391_v34  ;;  %v393_v40 = vld [vmem:[#allocation6 + $0x70] sm:$0xff]  ;;  %v486_v43 = vld [vmem:[#allocation8 + $0x60] sm:$0xff] }
  0x77   : > { %882 = vmatpush3.bf16.msra.mxu1 %v881_v18  ;;  %v394_v41 = vld [vmem:[#allocation6 + $0x78] sm:$0xff]  ;;  %v893_v42 = vpack.c.bf16 %v485_v38, %v484_v37  ;;  %v487_v44 = vld [vmem:[#allocation8 + $0x68] sm:$0xff]  ;;  %v488_v48 = vld [vmem:[#allocation8 + $0x70] sm:$0xff]  ;;  %p1086_p9 = por %p1085_p5, %p1084_p3 }
  0x78   : > { %883 = vmatprep.subr.bf16.mxu1 %v1170_v0  ;;  %v875_v45 = vpack.c.bf16 %v394_v41, %v393_v40  ;;  %v896_v46 = vpack.c.bf16 %v487_v44, %v486_v43  ;;  %v365_v47 = vld [vmem:[%s1405_s8] sm:$0xff] }
  0x79   : > { %861 = vmatpush3.bf16.msra.mxu0 %v860_v14  ;;  %v489_v49 = vld [vmem:[#allocation8 + $0x78] sm:$0xff]  ;;  %v742_v51 = vld [vmem:[%s1501_s2] ss:$0 sm:$0xff]  ;;  %p1087_p11 = pnand %p1086_p9, %p1080_p10 }
  0x7a   : > { %862 = vmatprep.subr.bf16.mxu0 %v1170_v0  ;;  %v899_v50 = vpack.c.bf16 %v489_v49, %v488_v48  ;;  %v741_v56 = vld [vmem:[%s1503_s4] ss:$0 sm:$0xff] }
  0x7b   : > { %885 = vmatpush3.bf16.msra.mxu1 %v884_v24  ;;  %v377_v57 = vadd.f32 %v741_v56, %v365_v47  ;;  %v743_v7 = vld [vmem:[%s1504_s5] ss:$0 sm:$0xff] }
  0x7c   : > { %886 = vmatprep.subr.bf16.mxu1 %v1170_v0  ;;  %v744_v10 = vld [vmem:[%s1505_s6] ss:$0 sm:$0xff] }
  0x7d   : > { %864 = vmatpush3.bf16.msra.mxu0 %v863_v21 }
  0x7e   : > { %865 = vmatprep.subr.bf16.mxu0 %v1170_v0 }
  0x7f   : > { %888 = vmatpush3.bf16.msra.mxu1 %v887_v30 }
  0x80   : > { %889 = vmatprep.subr.bf16.mxu1 %v1170_v0 }
  0x81   : > { %867 = vmatpush3.bf16.msra.mxu0 %v866_v27 }
  0x82   : > { %868 = vmatprep.subr.bf16.mxu0 %v1170_v0 }
  0x83   : > { %891 = vmatpush3.bf16.msra.mxu1 %v890_v36 }
  0x84   : > { %892 = vmatprep.subr.bf16.mxu1 %v1170_v0 }
  0x85   : > { %870 = vmatpush3.bf16.msra.mxu0 %v869_v33 }
  0x86   : > { %871 = vmatprep.subr.bf16.mxu0 %v1170_v0 }
  0x87   : > { %894 = vmatpush3.bf16.msra.mxu1 %v893_v42 }
  0x88   : > { %895 = vmatprep.subr.bf16.mxu1 %v1170_v0 }
  0x89   : > { %873 = vmatpush3.bf16.msra.mxu0 %v872_v39 }
  0x8a   : > { %874 = vmatprep.subr.bf16.mxu0 %v1170_v0 }
  0x8b   : > { %897 = vmatpush3.bf16.msra.mxu1 %v896_v46 }
  0x8c   : > { %898 = vmatprep.subr.bf16.mxu1 %v1170_v0 }
  0x8d   : > { %876 = vmatpush3.bf16.msra.mxu0 %v875_v45 }
  0x8f   : > { %900 = vmatpush3.bf16.msra.mxu1 %v899_v50 }
  0x90   : > { %816 = vmatmul.mubr.f32.vlgmr.msra.gmra.mrb[0].mxu0 %v365_v47 }
 0x163   : > { %v468_v52 = vpop.f32.mrb[0].mxu0 }
 0x164   : > { %v469_v53 = vadd.f32 %v742_v51, %v468_v52  ;;  %v817_v54 = vpop.f32.mrb[1].mxu0 }
 0x166   : > { %v472_v55 = vmax.f32 %v469_v53, 0.0 }
 0x168   : > { %851 = vmatmul.mubr.f32.vlgmr.msra.gmra.mrb[0].mxu1 %v472_v55 }
 0x23b   : > { %v556_v58 = vpop.f32.mrb[0].mxu1 }
 0x23c   : > { %v560_v59 = vadd.f32 %v556_v58, %v377_v57  ;;  %v852_v60 = vpop.f32.mrb[1].mxu1 }
 0x23e   : > { %566 = vadd.xlane.f32.xlu0 %v560_v59 }
 0x2cb   : > { %v567_v63 = vpop.xlane.xlu0 %566 }
 0x2cc   : > { %v568_v0 = vmul.f32 0.03125, %v567_v63 }
 0x2ce   : > { %v569_v1 = vsub.f32 %v560_v59, %v568_v0 }
 0x2d0   : > { %v575_v2 = vsel %vm572_vm1, %v569_v1, 0.0 }
 0x2d1   : > { %v576_v3 = vmul.f32 %v575_v2, %v575_v2 }
 0x2d3   : > { %577 = vadd.xlane.f32.xlu0 %v576_v3 }
 0x360   : > { %v578_v4 = vpop.xlane.xlu0 %577 }
 0x361   : > { %v579_v5 = vmul.f32 0.03125, %v578_v4 }
 0x363   : > { %v581_v6 = vadd.f32 1e-05, %v579_v5 }
 0x365   : > { %989 = vrsqrt.f32 %v581_v6 }
 0x36f   : > { %v990_v8 = vpop.eup %989 }
 0x370   : > { %v589_v9 = vmul.f32 %v990_v8, %v743_v7 }
 0x372   : > { %v590_v11 = vmul.f32 %v589_v9, %v575_v2 }
 0x374   : > { %v598_v12 = vadd.f32 %v744_v10, %v590_v11 }
 0x376   : > { %599 = vst [vmem:[%s360_s22] sm:$0xff] %v598_v12 }
 0x377   : > { %1090 = shalt.err (!%p1087_p11)
}
 0x378   : > { %s1091_s21 = scalar_lea.hbm %s1450_s9, 128  ;;  %s1095_s12 = scalar_lea.hbm %s1506_s7, 256 }
 0x379   : > { %p1092_p0 = scmp.ne.s32.totalorder %s1450_s9, %s1091_s21  ;;  %p1096_p6 = scmp.lt.u32.totalorder %s1450_s9, %s1506_s7 }
 0x37a   : > { %p1097_p7 = scmp.lt.u32.totalorder %s1095_s12, %s1091_s21  ;;  %p1099_p8 = scmp.lt.u32.totalorder %s1091_s21, %s1450_s9 }
 0x37b   : > { %p1093_p4 = pnand %p1092_p0, %p1525_p12 }
 0x37c   : > { %p1098_p2 = por %p1097_p7, %p1096_p6 }
 0x37d   : > { %p1094_p13 = pneg %p1093_p4 }
 0x37e   : > { %p1100_p1 = por %p1099_p8, %p1098_p2 }
 0x380   : > { %p1101_p10 = pnand %p1100_p1, %p1094_p13 }
 0x382   : > { %1104 = shalt.err (!%p1101_p10)
}
 0x383   : > { %911 = dma.vmem_to_hbm [thread:$0]  (%p1525_p12), %s1452_s18, 128, %s1450_s9, %s601_s11  }
 0x384 PF: > { %s1526_s22 = sld [smem:[#allocation13_spill]]  ;;  %s1527_s30 = sld [smem:[#allocation14_spill]] }
 0x385   : > { %p1529_p5 = scmp.ge.s32.totalorder %s1163_s29, 2 }
 0x38a   : > { %s626_s8 = sand.u32 1, %s1526_s22   ;;  %p1528_p3 = scmp.ne.s32.totalorder %s1527_s30, 0 }
 0x38b   : > { %s627_s13 = scalar_lea.sflag [#allocation5], %s626_s8 }
 0x38c   : > { %p925_p9 = pnand %p1529_p5, %p1528_p3 }
 0x38e   : > { %1138 = dma.done.wait (!%p925_p9), %s627_s13, 128  }
 0x38f   : > { %1140 = vsyncadd (!%p925_p9), %s627_s13, 4294967168  ;;  %s24_s29 = sadd.s32 1, %s1163_s29   ;;  %s1530_s24 = smov %s1147_s25 }
 0x390   : > { %p21_p11 = scmp.ge.s32.totalorder %s24_s29, 4   ;;  %s1531_s25 = smov %s1151_s26 }
 0x391   : > { %s1532_s26 = smov %s1356_s19  ;;  %s1533_s27 = smov %s1159_s28 }
 0x392   : > { %s1534_s28 = smov %s1536_s20  ;;  %23 = sbr.rel (!%p21_p11) target bundleno = 7 (0x7), region = 114 }
 0x399   :  { %632 = vsyncpa [#allocation4], 1 }
 0x39a   :  { %634 = vsyncpa [#allocation4 + $0x1], 1 }
 0x39b   :  { %635 = vsyncpa [#allocation7], 1 }
 0x39c   :  { %636 = vsyncpa [#allocation5], 1 }
 0x39d   :  { %638 = vsyncpa [#allocation5 + $0x1], 1 }

// kernel: tpu_custom_call.1
= control target key start
LH: loop header
LB: loop body
LE: loop exit
PB: predicated region body
PF: predicated region fallthrough
CT: control target
= control target key end

     0   :  { %12 = vsyncpa [#allocation4], 0  ;;  %s1499_s0 = inlined_call_operand.hbm [shape: f32[16,128], index: 0, kind: input, shape index: {}]   ;;  %s1500_s1 = inlined_call_operand.hbm [shape: f32[128,128], index: 1, kind: input, shape index: {}]   ;;  %s1501_s2 = inlined_call_operand.vmem [shape: f32[1,128], index: 2, kind: input, shape index: {}]   ;;  %s1502_s3 = inlined_call_operand.hbm [shape: f32[128,128], index: 3, kind: input, shape index: {}]   ;;  %s1503_s4 = inlined_call_operand.vmem [shape: f32[1,128], index: 4, kind: input, shape index: {}]   ;;  %s1504_s5 = inlined_call_operand.vmem [shape: f32[1,128], index: 5, kind: input, shape index: {}]   ;;  %s1505_s6 = inlined_call_operand.vmem [shape: f32[1,128], index: 6, kind: input, shape index: {}]   ;;  %s1506_s7 = inlined_call_operand.hbm [shape: f32[16,128], index: 7, kind: output, shape index: {}]  }
   0x1   :  { %14 = vsyncpa [#allocation4 + $0x1], 0 }
   0x2   :  { %15 = vsyncpa [#allocation7], 0 }
   0x3   :  { %16 = vsyncpa [#allocation5], 0 }
   0x4   :  { %18 = vsyncpa [#allocation5 + $0x1], 0  ;;  %s1214_s24 = smov 0   ;;  %s1216_s25 = smov 0  }
   0x5   :  { %s1218_s26 = smov 0   ;;  %s1220_s27 = smov 0  }
   0x6   :  { %s1222_s28 = smov 0   ;;  %s1224_s29 = smov 0  }
   0x7 LB: > { %1513 = sst [smem:[#allocation13_spill]] %s1143_s24  ;;  %s727_s30 = sadd.s32 4294967295, %s1163_s29   ;;  %s1163_s29 = sphi %s1224_s29, %s24_s29   ;;  %s1159_s28 = sphi %s1222_s28, %s1534_s28   ;;  %s1155_s27 = sphi %s1220_s27, %s1533_s27   ;;  %s1151_s26 = sphi %s1218_s26, %s1532_s26   ;;  %s1147_s25 = sphi %s1216_s25, %s1531_s25   ;;  %s1143_s24 = sphi %s1214_s24, %s1530_s24  }
   0x8   : > { %s728_s8 = sadd.s32 4294967294, %s1163_s29   ;;  %p56_p0 = scmp.ne.s32.totalorder %s1147_s25, %s1143_s24 }
   0x9   : > { %p1248_p1 = scmp.eq.s32.totalorder %s727_s30, 0  ;;  %p1252_p2 = scmp.eq.s32.totalorder %s727_s30, 1 }
   0xa   : > { %p227_p3 = scmp.eq.s32.totalorder %s728_s8, 1  ;;  %p729_p5 = scmp.ge.s32.totalorder %s1163_s29, 1 }
   0xb   : > { %s1514_s9 = scalar_select %p1248_p1, 1, 0 }
   0xc   : > { %p1258_p4 = por %p1248_p1, %p56_p0  ;;  %p1263_p6 = por %p227_p3, %p56_p0 }
   0xd   : > { %p234_p7 = scmp.lt.s32.totalorder %s1163_s29, 3  ;;  %s1165_s14 = smov [#allocation6]  }
   0xe   : > { %s1516_s11 = scalar_select %p1258_p4, 1, 0 }
   0xf   : > { %s1517_s12 = scalar_select %p1263_p6, 1, 0 }
  0x10   : > { %p1268_p8 = pnand %p729_p5, %p234_p7  ;;  %s248_s15 = sshll.u32 %s1165_s14, 4  ;;  %s1272_s15 = int_to_ptr.vmem [resolvable:$true] %s248_s15 }
  0x11   : > { %1518 = sst [smem:[#allocation14_spill]] %s1517_s12  ;;  %s1166_s17 = smov [#allocation8]  }
  0x12   : > { %p913_p9 = pneg %p1268_p8  ;;  %s270_s18 = sshll.u32 %s1166_s17, 4  ;;  %s1283_s18 = int_to_ptr.vmem [resolvable:$true] %s270_s18 }
  0x13   : > { %s991_s21 = scalar_lea.hbm %s1500_s1, 2048 }
  0x14   : > { %p1279_p11 = pnand %p913_p9, %p1248_p1  ;;  %p992_p12 = scmp.ne.s32.totalorder %s1500_s1, %s991_s21 }
  0x15   : > { %p998_p5 = scmp.lt.u32.totalorder %s991_s21, %s1500_s1 }
  0x16   : > { %p993_p13 = pneg %p1279_p11 }
  0x18   : > { %p994_p0 = pnand %p993_p13, %p992_p12 }
  0x1a   : > { %p995_p3 = pneg %p994_p0 }
  0x1c   : > { %p1000_p7 = pnand %p998_p5, %p995_p3 }
  0x1e   : > { %1003 = shalt.err (!%p1000_p7)
}
  0x1f   : > { %s1004_s14 = scalar_lea.vmem %s1272_s15, 2048  ;;  %p1012_p1 = scmp.lt.s32.totalorder %s1272_s15, %s1272_s15 }
  0x20   : > { %p1005_p9 = scmp.ne.s32.totalorder %s1272_s15, %s1004_s14  ;;  %p1013_p12 = scmp.lt.s32.totalorder %s1004_s14, %s1004_s14 }
  0x22   : > { %p1007_p10 = pnand %p1005_p9, %p993_p13  ;;  %p1014_p0 = por %p1013_p12, %p1012_p1 }
  0x24   : > { %p1008_p6 = pneg %p1007_p10 }
  0x26   : > { %p1015_p4 = pnand %p1014_p0, %p1008_p6 }
  0x28   : > { %1018 = shalt.err (!%p1015_p4)
}
  0x29   : > { %s1167_s17 = smov 128   ;;  %s1168_s19 = smov 8  }
  0x2a   : > { %916 = dma.hbm_to_vmem [thread:$0]  (!%p1279_p11), %s1500_s1, 2048, %s1272_s15, [#allocation7], %s1167_s17, %s1167_s17, %s1168_s19  }
  0x2b   : > { %s1019_s30 = scalar_lea.hbm %s1502_s3, 2048 }
  0x2c   : > { %p1020_p1 = scmp.ne.s32.totalorder %s1502_s3, %s1019_s30  ;;  %p1026_p10 = scmp.lt.u32.totalorder %s1019_s30, %s1502_s3 }
  0x2e   : > { %p1022_p4 = pnand %p1020_p1, %p993_p13 }
  0x30   : > { %p1023_p6 = pneg %p1022_p4 }
  0x32   : > { %p1028_p3 = pnand %p1026_p10, %p1023_p6 }
  0x34   : > { %1031 = shalt.err (!%p1028_p3)
}
  0x35   : > { %s1032_s15 = scalar_lea.vmem %s1283_s18, 2048  ;;  %p1040_p12 = scmp.lt.s32.totalorder %s1283_s18, %s1283_s18 }
  0x36   : > { %p1033_p5 = scmp.ne.s32.totalorder %s1283_s18, %s1032_s15  ;;  %p1041_p0 = scmp.lt.s32.totalorder %s1032_s15, %s1032_s15 }
  0x38   : > { %p1035_p7 = pnand %p1033_p5, %p993_p13  ;;  %p1042_p1 = por %p1041_p0, %p1040_p12 }
  0x3a   : > { %p1036_p9 = pneg %p1035_p7 }
  0x3c   : > { %p1043_p4 = pnand %p1042_p1, %p1036_p9 }
  0x3e   : > { %1046 = shalt.err (!%p1043_p4)
}
  0x3f   : > { %919 = dma.hbm_to_vmem [thread:$0]  (!%p1279_p11), %s1502_s3, 2048, %s1283_s18, [#allocation7], %s1167_s17, %s1167_s17, %s1168_s19  }
  0x40   : > { %s36_s20 = sadd.s32 1, %s1159_s28  ;;  %s43_s21 = sadd.s32 1, %s1151_s26 }
  0x41   : > { %p38_p13 = scmp.ge.s32.totalorder %s36_s20, 2  ;;  %p50_p6 = scmp.ne.s32.totalorder %s1151_s26, %s1147_s25 }
  0x42   : > { %p51_p10 = scmp.eq.s32.totalorder %s1163_s29, 0  ;;  %p930_p3 = scmp.lt.s32.totalorder %s1163_s29, 2 }
  0x43   : > { %s1536_s20 = smov (%p38_p13, %s36_s20), 0  ;;  %p1347_p7 = por %p1252_p2, %p50_p6 }
  0x44   : > { %p52_p5 = por %p51_p10, %p50_p6  ;;  %s40_s22 = ssub.s32 %s1159_s28, %s1536_s20 }
  0x45   : > { %s1521_s16 = scalar_select %p1347_p7, 1, 0 }
  0x46   : > { %s293_s23 = sand.u32 1, %s1151_s26   ;;  %p41_p9 = scmp.eq.s32.totalorder %s40_s22, 0 }
  0x47   : > { %s734_s18 = sshll.u32 %s293_s23, 3  ;;  %s735_s17 = sshll.u32 %s1159_s28, 7 }
  0x48   : > { %s1356_s19 = scalar_select %p41_p9, %s1151_s26, %s43_s21  }
  0x49   : > { %s1361_s14 = scalar_lea.hbm %s1499_s0, %s735_s17  ;;  %s297_s10 = scalar_lea.vmem [#allocation3], %s734_s18 }
  0x4a   : > { %s304_s15 = sshll.u32 %s297_s10, 4  ;;  %p1365_p2 = pnand %p930_p3, %p52_p5  ;;  %s1369_s15 = int_to_ptr.vmem [resolvable:$true] %s304_s15 }
  0x4b   : > { %s294_s12 = scalar_lea.sflag [#allocation4], %s293_s23  ;;  %s1047_s21 = scalar_lea.hbm %s1361_s14, 128 }
  0x4c   : > { %p1048_p11 = scmp.ne.s32.totalorder %s1361_s14, %s1047_s21  ;;  %p1049_p12 = pneg %p1365_p2 }
  0x4d   : > { %s1052_s17 = scalar_lea.hbm %s1499_s0, 256  ;;  %p1053_p4 = scmp.lt.u32.totalorder %s1361_s14, %s1499_s0 }
  0x4e   : > { %p1050_p0 = pnand %p1049_p12, %p1048_p11  ;;  %p1054_p13 = scmp.lt.u32.totalorder %s1052_s17, %s1047_s21 }
  0x4f   : > { %p1056_p10 = scmp.lt.u32.totalorder %s1047_s21, %s1361_s14 }
  0x50   : > { %p1051_p1 = pneg %p1050_p0  ;;  %p1055_p6 = por %p1054_p13, %p1053_p4 }
  0x52   : > { %p1057_p3 = por %p1056_p10, %p1055_p6 }
  0x54   : > { %p1058_p5 = pnand %p1057_p3, %p1051_p1 }
  0x56   : > { %1061 = shalt.err (!%p1058_p5)
}
  0x57   : > { %s1062_s23 = scalar_lea.vmem %s1369_s15, 128  ;;  %s1169_s10 = smov [#allocation3]  }
  0x58   : > { %p1063_p9 = scmp.ne.s32.totalorder %s1369_s15, %s1062_s23  ;;  %s1067_s22 = sshll.u32 %s1169_s10, 4  ;;  %s1068_s22 = int_to_ptr.vmem [resolvable:$false] %s1067_s22 }
  0x59   : > { %s1069_s18 = scalar_lea.vmem %s1068_s22, 256  ;;  %p1070_p7 = scmp.lt.s32.totalorder %s1369_s15, %s1068_s22 }
  0x5a   : > { %p1065_p11 = pnand %p1063_p9, %p1049_p12  ;;  %p1071_p4 = scmp.lt.s32.totalorder %s1069_s18, %s1062_s23 }
  0x5c   : > { %p1066_p0 = pneg %p1065_p11  ;;  %p1072_p13 = por %p1071_p4, %p1070_p7 }
  0x5e   : > { %p1073_p6 = pnand %p1072_p13, %p1066_p0 }
  0x60   : > { %1076 = shalt.err (!%p1073_p6)
}
  0x61   : > { %923 = dma.hbm_to_vmem [thread:$0]  (!%p1365_p2), %s1361_s14, 128, %s1369_s15, %s294_s12  }
  0x62   : > { %313 = sbr.rel (%p1268_p8) target bundleno = 900 (0x384), region = 48  ;;  %s1399_s21 = sand.u32 (!%p1268_p8), 1, %s1147_s25  }
  0x63   : > { %s737_s17 = sshll.u32 (!%p1268_p8), %s1399_s21, 3  ;;  %s316_s30 = scalar_lea.sflag (!%p1268_p8), [#allocation4], %s1399_s21 }
  0x64   : > { %s1405_s8 = scalar_lea.vmem (!%p1268_p8), [#allocation3], %s737_s17  ;;  %p1523_p7 = scmp.ne.s32.totalorder (!%p1268_p8), %s1516_s11, 0 }
  0x69   : > { %1130 = dma.done.wait (%p1523_p7), %s316_s30, 128  }
  0x6a   : > { %1132 = vsyncadd (%p1523_p7), %s316_s30, 4294967168  ;;  %p1524_p2 = scmp.ne.s32.totalorder %s1514_s9, 0 }
  0x6c   : > { %1134 = dma.done.wait (%p1524_p2), [#allocation7], 4096  }
  0x6d   : > { %1136 = vsyncadd (%p1524_p2), [#allocation7], 4294963200  ;;  %v1170_v0 = vmov 0.0|0.0   ;;  %vm1171_vm0 = vmmov 0   ;;  %v1172_v1 = vmov 0.0   ;;  %v379_v2 = vld [vmem:[#allocation6] sm:$0xff]  ;;  %v570_v61 = vlaneseq }
  0x6e   : > { %853 = vmatprep.subr.bf16.mxu0 %v1170_v0  ;;  %815 = vmatprep.mubr.msk.f32.mxu0 %vm1171_vm0, %v1172_v1  ;;  %v380_v3 = vld [vmem:[#allocation6 + $0x8] sm:$0xff]  ;;  %v381_v4 = vld [vmem:[#allocation6 + $0x10] sm:$0xff]  ;;  %v382_v6 = vld [vmem:[#allocation6 + $0x18] sm:$0xff]  ;;  %s746_s10 = sshll.u32 %s1155_s27, 7  ;;  %s360_s22 = scalar_lea.vmem [#allocation9], %s737_s17 }
  0x6f   : > { %877 = vmatprep.subr.bf16.mxu1 %v1170_v0  ;;  %850 = vmatprep.mubr.msk.f32.mxu1 %vm1171_vm0, %v1172_v1  ;;  %v854_v5 = vpack.c.bf16 %v380_v3, %v379_v2  ;;  %v857_v7 = vpack.c.bf16 %v382_v6, %v381_v4  ;;  %v383_v8 = vld [vmem:[#allocation6 + $0x20] sm:$0xff]  ;;  %v384_v9 = vld [vmem:[#allocation6 + $0x28] sm:$0xff]  ;;  %v476_v12 = vld [vmem:[#allocation8 + $0x10] sm:$0xff]  ;;  %v571_v62 = vand.u32 127, %v570_v61  ;;  %s614_s18 = sshll.u32 %s360_s22, 4  ;;  %s1450_s9 = scalar_lea.hbm %s1506_s7, %s746_s10  ;;  %s1452_s18 = int_to_ptr.vmem [resolvable:$true] %s614_s18 }
  0x70   : > { %v474_v10 = vld [vmem:[#allocation8] sm:$0xff]  ;;  %v475_v11 = vld [vmem:[#allocation8 + $0x8] sm:$0xff]  ;;  %v477_v13 = vld [vmem:[#allocation8 + $0x18] sm:$0xff]  ;;  %v860_v14 = vpack.c.bf16 %v384_v9, %v383_v8  ;;  %s601_s11 = scalar_lea.sflag [#allocation5], %s1399_s21  ;;  %s1077_s13 = scalar_lea.vmem %s1452_s18, 128 }
  0x71   : > { %855 = vmatpush3.bf16.msra.mxu0 %v854_v5  ;;  %v878_v15 = vpack.c.bf16 %v475_v11, %v474_v10  ;;  %v385_v16 = vld [vmem:[#allocation6 + $0x30] sm:$0xff]  ;;  %v386_v17 = vld [vmem:[#allocation6 + $0x38] sm:$0xff]  ;;  %v881_v18 = vpack.c.bf16 %v477_v13, %v476_v12  ;;  %v478_v19 = vld [vmem:[#allocation8 + $0x20] sm:$0xff]  ;;  %vm572_vm1 = vcmp.lt.s32.totalorder %v571_v62, 32  ;;  %p1078_p8 = scmp.ne.s32.totalorder %s1452_s18, %s1077_s13  ;;  %p1525_p12 = scmp.ne.s32.totalorder %s1521_s16, 0 }
  0x72   : > { %856 = vmatprep.subr.bf16.mxu0 %v1170_v0  ;;  %v479_v20 = vld [vmem:[#allocation8 + $0x28] sm:$0xff]  ;;  %v863_v21 = vpack.c.bf16 %v386_v17, %v385_v16  ;;  %v387_v22 = vld [vmem:[#allocation6 + $0x40] sm:$0xff]  ;;  %v480_v25 = vld [vmem:[#allocation8 + $0x30] sm:$0xff]  ;;  %s1173_s27 = smov [#allocation9]  }
  0x73   : > { %879 = vmatpush3.bf16.msra.mxu1 %v878_v15  ;;  %v388_v23 = vld [vmem:[#allocation6 + $0x48] sm:$0xff]  ;;  %v884_v24 = vpack.c.bf16 %v479_v20, %v478_v19  ;;  %v481_v26 = vld [vmem:[#allocation8 + $0x38] sm:$0xff]  ;;  %v389_v28 = vld [vmem:[#allocation6 + $0x50] sm:$0xff]  ;;  %p1079_p1 = pnand %p1078_p8, %p1525_p12  ;;  %s1081_s17 = sshll.u32 %s1173_s27, 4  ;;  %s1082_s17 = int_to_ptr.vmem [resolvable:$false] %s1081_s17 }
  0x74   : > { %880 = vmatprep.subr.bf16.mxu1 %v1170_v0  ;;  %v866_v27 = vpack.c.bf16 %v388_v23, %v387_v22  ;;  %v390_v29 = vld [vmem:[#allocation6 + $0x58] sm:$0xff]  ;;  %v887_v30 = vpack.c.bf16 %v481_v26, %v480_v25  ;;  %v482_v31 = vld [vmem:[#allocation8 + $0x40] sm:$0xff]  ;;  %v483_v32 = vld [vmem:[#allocation8 + $0x48] sm:$0xff]  ;;  %s1083_s14 = scalar_lea.vmem %s1082_s17, 256  ;;  %p1084_p3 = scmp.lt.s32.totalorder %s1452_s18, %s1082_s17 }
  0x75   : > { %858 = vmatpush3.bf16.msra.mxu0 %v857_v7  ;;  %v869_v33 = vpack.c.bf16 %v390_v29, %v389_v28  ;;  %v391_v34 = vld [vmem:[#allocation6 + $0x60] sm:$0xff]  ;;  %v392_v35 = vld [vmem:[#allocation6 + $0x68] sm:$0xff]  ;;  %v890_v36 = vpack.c.bf16 %v483_v32, %v482_v31  ;;  %v484_v37 = vld [vmem:[#allocation8 + $0x50] sm:$0xff]  ;;  %p1080_p10 = pneg %p1079_p1  ;;  %p1085_p5 = scmp.lt.s32.totalorder %s1083_s14, %s1077_s13 }
  0x76   : > { %859 = vmatprep.subr.bf16.mxu0 %v1170_v0  ;;  %v485_v38 = vld [vmem:[#allocation8 + $0x58] sm:$0xff]  ;;  %v872_v39 = vpack.c.bf16 %v392_v35, %v391_v34  ;;  %v393_v40 = vld [vmem:[#allocation6 + $0x70] sm:$0xff]  ;;  %v486_v43 = vld [vmem:[#allocation8 + $0x60] sm:$0xff] }
  0x77   : > { %882 = vmatpush3.bf16.msra.mxu1 %v881_v18  ;;  %v394_v41 = vld [vmem:[#allocation6 + $0x78] sm:$0xff]  ;;  %v893_v42 = vpack.c.bf16 %v485_v38, %v484_v37  ;;  %v487_v44 = vld [vmem:[#allocation8 + $0x68] sm:$0xff]  ;;  %v488_v48 = vld [vmem:[#allocation8 + $0x70] sm:$0xff]  ;;  %p1086_p9 = por %p1085_p5, %p1084_p3 }
  0x78   : > { %883 = vmatprep.subr.bf16.mxu1 %v1170_v0  ;;  %v875_v45 = vpack.c.bf16 %v394_v41, %v393_v40  ;;  %v896_v46 = vpack.c.bf16 %v487_v44, %v486_v43  ;;  %v365_v47 = vld [vmem:[%s1405_s8] sm:$0xff] }
  0x79   : > { %861 = vmatpush3.bf16.msra.mxu0 %v860_v14  ;;  %v489_v49 = vld [vmem:[#allocation8 + $0x78] sm:$0xff]  ;;  %v742_v51 = vld [vmem:[%s1501_s2] ss:$0 sm:$0xff]  ;;  %p1087_p11 = pnand %p1086_p9, %p1080_p10 }
  0x7a   : > { %862 = vmatprep.subr.bf16.mxu0 %v1170_v0  ;;  %v899_v50 = vpack.c.bf16 %v489_v49, %v488_v48  ;;  %v741_v56 = vld [vmem:[%s1503_s4] ss:$0 sm:$0xff] }
  0x7b   : > { %885 = vmatpush3.bf16.msra.mxu1 %v884_v24  ;;  %v377_v57 = vadd.f32 %v741_v56, %v365_v47  ;;  %v743_v7 = vld [vmem:[%s1504_s5] ss:$0 sm:$0xff] }
  0x7c   : > { %886 = vmatprep.subr.bf16.mxu1 %v1170_v0  ;;  %v744_v10 = vld [vmem:[%s1505_s6] ss:$0 sm:$0xff] }
  0x7d   : > { %864 = vmatpush3.bf16.msra.mxu0 %v863_v21 }
  0x7e   : > { %865 = vmatprep.subr.bf16.mxu0 %v1170_v0 }
  0x7f   : > { %888 = vmatpush3.bf16.msra.mxu1 %v887_v30 }
  0x80   : > { %889 = vmatprep.subr.bf16.mxu1 %v1170_v0 }
  0x81   : > { %867 = vmatpush3.bf16.msra.mxu0 %v866_v27 }
  0x82   : > { %868 = vmatprep.subr.bf16.mxu0 %v1170_v0 }
  0x83   : > { %891 = vmatpush3.bf16.msra.mxu1 %v890_v36 }
  0x84   : > { %892 = vmatprep.subr.bf16.mxu1 %v1170_v0 }
  0x85   : > { %870 = vmatpush3.bf16.msra.mxu0 %v869_v33 }
  0x86   : > { %871 = vmatprep.subr.bf16.mxu0 %v1170_v0 }
  0x87   : > { %894 = vmatpush3.bf16.msra.mxu1 %v893_v42 }
  0x88   : > { %895 = vmatprep.subr.bf16.mxu1 %v1170_v0 }
  0x89   : > { %873 = vmatpush3.bf16.msra.mxu0 %v872_v39 }
  0x8a   : > { %874 = vmatprep.subr.bf16.mxu0 %v1170_v0 }
  0x8b   : > { %897 = vmatpush3.bf16.msra.mxu1 %v896_v46 }
  0x8c   : > { %898 = vmatprep.subr.bf16.mxu1 %v1170_v0 }
  0x8d   : > { %876 = vmatpush3.bf16.msra.mxu0 %v875_v45 }
  0x8f   : > { %900 = vmatpush3.bf16.msra.mxu1 %v899_v50 }
  0x90   : > { %816 = vmatmul.mubr.f32.vlgmr.msra.gmra.mrb[0].mxu0 %v365_v47 }
 0x163   : > { %v468_v52 = vpop.f32.mrb[0].mxu0 }
 0x164   : > { %v469_v53 = vadd.f32 %v742_v51, %v468_v52  ;;  %v817_v54 = vpop.f32.mrb[1].mxu0 }
 0x166   : > { %v472_v55 = vmax.f32 %v469_v53, 0.0 }
 0x168   : > { %851 = vmatmul.mubr.f32.vlgmr.msra.gmra.mrb[0].mxu1 %v472_v55 }
 0x23b   : > { %v556_v58 = vpop.f32.mrb[0].mxu1 }
 0x23c   : > { %v560_v59 = vadd.f32 %v556_v58, %v377_v57  ;;  %v852_v60 = vpop.f32.mrb[1].mxu1 }
 0x23e   : > { %566 = vadd.xlane.f32.xlu0 %v560_v59 }
 0x2cb   : > { %v567_v63 = vpop.xlane.xlu0 %566 }
 0x2cc   : > { %v568_v0 = vmul.f32 0.03125, %v567_v63 }
 0x2ce   : > { %v569_v1 = vsub.f32 %v560_v59, %v568_v0 }
 0x2d0   : > { %v575_v2 = vsel %vm572_vm1, %v569_v1, 0.0 }
 0x2d1   : > { %v576_v3 = vmul.f32 %v575_v2, %v575_v2 }
 0x2d3   : > { %577 = vadd.xlane.f32.xlu0 %v576_v3 }
 0x360   : > { %v578_v4 = vpop.xlane.xlu0 %577 }
 0x361   : > { %v579_v5 = vmul.f32 0.03125, %v578_v4 }
 0x363   : > { %v581_v6 = vadd.f32 1e-05, %v579_v5 }
 0x365   : > { %989 = vrsqrt.f32 %v581_v6 }
 0x36f   : > { %v990_v8 = vpop.eup %989 }
 0x370   : > { %v589_v9 = vmul.f32 %v990_v8, %v743_v7 }
 0x372   : > { %v590_v11 = vmul.f32 %v589_v9, %v575_v2 }
 0x374   : > { %v598_v12 = vadd.f32 %v744_v10, %v590_v11 }
 0x376   : > { %599 = vst [vmem:[%s360_s22] sm:$0xff] %v598_v12 }
 0x377   : > { %1090 = shalt.err (!%p1087_p11)
}
 0x378   : > { %s1091_s21 = scalar_lea.hbm %s1450_s9, 128  ;;  %s1095_s12 = scalar_lea.hbm %s1506_s7, 256 }
 0x379   : > { %p1092_p0 = scmp.ne.s32.totalorder %s1450_s9, %s1091_s21  ;;  %p1096_p6 = scmp.lt.u32.totalorder %s1450_s9, %s1506_s7 }
 0x37a   : > { %p1097_p7 = scmp.lt.u32.totalorder %s1095_s12, %s1091_s21  ;;  %p1099_p8 = scmp.lt.u32.totalorder %s1091_s21, %s1450_s9 }
 0x37b   : > { %p1093_p4 = pnand %p1092_p0, %p1525_p12 }
 0x37c   : > { %p1098_p2 = por %p1097_p7, %p1096_p6 }
 0x37d   : > { %p1094_p13 = pneg %p1093_p4 }
 0x37e   : > { %p1100_p1 = por %p1099_p8, %p1098_p2 }
 0x380   : > { %p1101_p10 = pnand %p1100_p1, %p1094_p13 }
 0x382   : > { %1104 = shalt.err (!%p1101_p10)
}
 0x383   : > { %911 = dma.vmem_to_hbm [thread:$0]  (%p1525_p12), %s1452_s18, 128, %s1450_s9, %s601_s11  }
 0x384 PF: > { %s1526_s22 = sld [smem:[#allocation13_spill]]  ;;  %s1527_s30 = sld [smem:[#allocation14_spill]] }
 0x385   : > { %p1529_p5 = scmp.ge.s32.totalorder %s1163_s29, 2 }
 0x38a   : > { %s626_s8 = sand.u32 1, %s1526_s22   ;;  %p1528_p3 = scmp.ne.s32.totalorder %s1527_s30, 0 }
 0x38b   : > { %s627_s13 = scalar_lea.sflag [#allocation5], %s626_s8 }
 0x38c   : > { %p925_p9 = pnand %p1529_p5, %p1528_p3 }
 0x38e   : > { %1138 = dma.done.wait (!%p925_p9), %s627_s13, 128  }
 0x38f   : > { %1140 = vsyncadd (!%p925_p9), %s627_s13, 4294967168  ;;  %s24_s29 = sadd.s32 1, %s1163_s29   ;;  %s1530_s24 = smov %s1147_s25 }
 0x390   : > { %p21_p11 = scmp.ge.s32.totalorder %s24_s29, 4   ;;  %s1531_s25 = smov %s1151_s26 }
 0x391   : > { %s1532_s26 = smov %s1356_s19  ;;  %s1533_s27 = smov %s1159_s28 }
 0x392   : > { %s1534_s28 = smov %s1536_s20  ;;  %23 = sbr.rel (!%p21_p11) target bundleno = 7 (0x7), region = 114 }
 0x399   :  { %632 = vsyncpa [#allocation4], 1 }
 0x39a   :  { %634 = vsyncpa [#allocation4 + $0x1], 1 }
 0x39b   :  { %635 = vsyncpa [#allocation7], 1 }
 0x39c   :  { %636 = vsyncpa [#allocation5], 1 }
 0x39d   :  { %638 = vsyncpa [#allocation5 + $0x1], 1 }

</bundles_post_ra>
